<compile_context>
chip_gen: v6e
topology: v6e:2x2x1
jax: 0.10.0
libtpu: 0.0.40
codegen_flags: <defaults>
</compile_context>

<pallas_src>
import functools

import jax
import jax.numpy as jnp
import numpy as np
from jax import lax
from jax.experimental import pallas as pl
from jax.experimental.pallas import tpu as pltpu


def _block_kernel(mw_ref, w1_ref, b1_ref, w2_ref, b2_ref, x_ref, o_ref,
                  *, N, C, Ce, H, W):
    """Gridless whole-Block kernel (everything VMEM-resident).

    mw_ref : (9, N*C, H*W) f32  per-tap (boundary-mask * folded dw weight) planes
    w1_ref : (Ce, C)       f32  pwconv1 weight
    b1_ref : (Ce, 1)       f32  pwconv1 bias (BN shift folded in)
    w2_ref : (C, Ce)       f32  pwconv2 weight
    b2_ref : (N*C, 1)      f32  pwconv2 bias, tiled per image row
    x_ref  : (N*C, H*W)    f32  input slab (NCHW flattened, lane-dense)
    o_ref  : (N*C, H*W)    f32  output slab
    """
    HW = H * W
    x = x_ref[...]                                      # (N*C, HW), 8 sublanes

    # ---- depthwise 3x3 conv (SAME padding), BN scale folded into weights ----
    # Neighbour access = XLU lane roll; boundary handling and per-channel tap
    # weights are pre-multiplied into mw_ref, so each tap is one FMA.
    acc = x * mw_ref[4]                                 # centre tap (no shift)
    for k in range(9):
        if k == 4:
            continue
        dh, dw = k // 3 - 1, k % 3 - 1
        shift = (-(dh * W + dw)) % HW                   # y[p] = x[p + dh*W + dw]
        acc = acc + pltpu.roll(x, shift, axis=1) * mw_ref[k]
    y = acc                                             # (N*C, HW)

    w1 = w1_ref[...]                                    # (Ce, C)
    b1 = b1_ref[...]                                    # (Ce, 1)
    w2 = w2_ref[...]                                    # (C, Ce)

    # ---- pointwise convs, per image, on full (Ce,HW)/(C,HW) slabs -----------
    outs = []
    for n in range(N):
        # pwconv1 (C -> Ce) + ReLU: broadcast-MACs with VMEM weight columns.
        acc1 = None
        for c in range(C):
            r = n * C + c
            row = jnp.broadcast_to(y[r:r + 1, :], (Ce, HW))
            term = row * w1[:, c:c + 1]
            acc1 = term if acc1 is None else acc1 + term
        h = jnp.maximum(acc1 + b1, 0.0)                 # (Ce, HW)

        # pwconv2 (Ce -> C): broadcast-MACs back down to C channels.
        acc2 = None
        for e in range(Ce):
            row = jnp.broadcast_to(h[e:e + 1, :], (C, HW))
            term = row * w2[:, e:e + 1]
            acc2 = term if acc2 is None else acc2 + term
        outs.append(acc2)                               # (C, HW)

    # bias + residual on the full 8-sublane slab; one lane-dense store.
    o_ref[...] = (jnp.concatenate(outs, axis=0) + b2_ref[...] + x).astype(o_ref.dtype)


@jax.jit
def block_forward(x, w_dw, gamma, beta, r_mean, r_var, eps, w1, b1, w2, b2):
    """Forward pass of `Block` (inference-mode BatchNorm).

    x:     (N, C, H, W) float32 (PyTorch NCHW layout)
    w_dw:  (C, 1, 3, 3) depthwise conv weight (no bias)
    gamma, beta, r_mean, r_var: (C,) BatchNorm2d params / running stats
    w1: (Ce, C, 1, 1), b1: (Ce,)  pwconv1
    w2: (C, Ce, 1, 1), b2: (C,)   pwconv2
    """
    N, C, H, W = x.shape
    Ce = w1.shape[0]
    assert w2.shape[0] == C, "residual add needs out_channels == in_channels"
    HW = H * W

    # ---- fold eval-mode BatchNorm into the weights (wrapper-side) -----------
    s = gamma / jnp.sqrt(r_var + eps)                    # per-channel scale
    bnb = beta - r_mean * s                              # per-channel shift
    wdw_f = w_dw[:, 0, :, :] * s[:, None, None]          # (C, 3, 3)
    w1m = w1[:, :, 0, 0]                                 # (Ce, C)
    w2m = w2[:, :, 0, 0]                                 # (C, Ce)
    b1f = (b1 + w1m @ bnb)[:, None]                      # (Ce, 1), BN shift folded

    # ---- constant 3x3 SAME-padding boundary masks over flattened H*W lanes --
    hh, ww = np.divmod(np.arange(HW), W)
    mask_np = np.zeros((9, HW), np.float32)
    for k in range(9):
        dh, dw = k // 3 - 1, k % 3 - 1
        mask_np[k] = ((hh + dh >= 0) & (hh + dh < H) &
                      (ww + dw >= 0) & (ww + dw < W)).astype(np.float32)
    masks = jnp.asarray(mask_np)                         # (9, HW), trace-time const

    # per-row (image, channel) folded depthwise tap weights, mask folded in:
    # row r = n*C + c of the slab gets tap weight wdw_f[c, kh, kw].
    row_w = jnp.tile(wdw_f.reshape(C, 9), (N, 1))        # (N*C, 9)
    dw_mw = masks[:, None, :] * jnp.transpose(row_w)[:, :, None]   # (9, N*C, HW)

    b2col = jnp.tile(b2[:, None], (N, 1))                # (N*C, 1)

    # ---- free layout: NCHW -> (N*C, H*W) slab (contiguous reshape) ----------
    x_slab = x.reshape(N * C, HW).astype(jnp.float32)

    kernel = functools.partial(_block_kernel, N=N, C=C, Ce=Ce, H=H, W=W)
    vspec = pl.BlockSpec(memory_space=pltpu.MemorySpace.VMEM)
    out_slab = pl.pallas_call(
        kernel,
        out_shape=jax.ShapeDtypeStruct((N * C, HW), jnp.float32),
        in_specs=[vspec] * 6,
        out_specs=vspec,
    )(dw_mw.astype(jnp.float32), w1m.astype(jnp.float32), b1f.astype(jnp.float32),
      w2m.astype(jnp.float32), b2col.astype(jnp.float32), x_slab)

    return out_slab.reshape(N, C, H, W)


def reference_forward(x, w_dw, gamma, beta, r_mean, r_var, eps, w1, b1, w2, b2):
    """Pure-JAX NCHW reference of the same Block forward (eval-mode BN)."""
    C = x.shape[1]
    hp = lax.Precision.HIGHEST
    dw = lax.conv_general_dilated(
        x, w_dw, window_strides=(1, 1), padding="SAME",
        dimension_numbers=("NCHW", "OIHW", "NCHW"),
        feature_group_count=C, precision=hp)
    s = gamma / jnp.sqrt(r_var + eps)
    y = dw * s[None, :, None, None] + (beta - r_mean * s)[None, :, None, None]
    h = lax.conv_general_dilated(
        y, w1, window_strides=(1, 1), padding="VALID",
        dimension_numbers=("NCHW", "OIHW", "NCHW"), precision=hp)
    h = jnp.maximum(h + b1[None, :, None, None], 0.0)
    out = lax.conv_general_dilated(
        h, w2, window_strides=(1, 1), padding="VALID",
        dimension_numbers=("NCHW", "OIHW", "NCHW"), precision=hp)
    out = out + b2[None, :, None, None]
    return x + out


if __name__ == "__main__":
    # Small shapes consistent with the module: batch=2, channels=4, spatial=16.
    N, C, H, W = 2, 4, 16, 16
    expansion = 2
    Ce = C * expansion
    eps = 1e-3   # nn.BatchNorm2d(..., eps=0.001)

    key = jax.random.PRNGKey(0)
    ks = jax.random.split(key, 10)

    x = jax.random.normal(ks[0], (N, C, H, W), dtype=jnp.float32)

    w_dw = 0.1 * jax.random.normal(ks[1], (C, 1, 3, 3), dtype=jnp.float32)

    gamma = 1.0 + 0.1 * jax.random.normal(ks[2], (C,), dtype=jnp.float32)
    beta = 0.1 * jax.random.normal(ks[3], (C,), dtype=jnp.float32)
    r_mean = 0.1 * jax.random.normal(ks[4], (C,), dtype=jnp.float32)
    r_var = jnp.abs(1.0 + 0.1 * jax.random.normal(ks[5], (C,), dtype=jnp.float32))

    w1 = 0.1 * jax.random.normal(ks[6], (Ce, C, 1, 1), dtype=jnp.float32)
    b1 = 0.1 * jax.random.normal(ks[7], (Ce,), dtype=jnp.float32)
    w2 = 0.1 * jax.random.normal(ks[8], (C, Ce, 1, 1), dtype=jnp.float32)
    b2 = 0.1 * jax.random.normal(ks[9], (C,), dtype=jnp.float32)

    out = block_forward(x, w_dw, gamma, beta, r_mean, r_var, eps, w1, b1, w2, b2)
    out = jax.block_until_ready(out)

    ref = reference_forward(x, w_dw, gamma, beta, r_mean, r_var, eps, w1, b1, w2, b2)
    np.testing.assert_allclose(np.asarray(out), np.asarray(ref), rtol=1e-4, atol=1e-4)

    print("KERNEL_OK")
</pallas_src>

<mosaic_0001>
module attributes {stable_mosaic.version = 11 : i64} {
  func.func @_block_kernel(%arg0: memref<9x8x256xf32, #tpu.memory_space<vmem>>, %arg1: memref<8x4xf32, #tpu.memory_space<vmem>>, %arg2: memref<8x1xf32, #tpu.memory_space<vmem>>, %arg3: memref<4x8xf32, #tpu.memory_space<vmem>>, %arg4: memref<8x1xf32, #tpu.memory_space<vmem>>, %arg5: memref<8x256xf32, #tpu.memory_space<vmem>>, %arg6: memref<8x256xf32, #tpu.memory_space<vmem>>) attributes {dimension_semantics = [], scalar_prefetch = 0 : i64, scratch_operands = 0 : i64, tpu.core_type = #tpu.core_type<tc>} {
    %c0 = arith.constant 0 : index
    %c0_0 = arith.constant 0 : index
    %0 = vector.load %arg5[%c0, %c0_0] : memref<8x256xf32, #tpu.memory_space<vmem>>, vector<8x256xf32>
    %c4 = arith.constant 4 : index
    %c0_1 = arith.constant 0 : index
    %c0_2 = arith.constant 0 : index
    %1 = vector.load %arg0[%c4, %c0_1, %c0_2] : memref<9x8x256xf32, #tpu.memory_space<vmem>>, vector<1x8x256xf32>
    %2 = vector.shape_cast %1 : vector<1x8x256xf32> to vector<8x256xf32>
    %3 = arith.mulf %0, %2 : vector<8x256xf32>
    %c17_i32 = arith.constant 17 : i32
    %4 = tpu.dynamic_rotate %0 by %c17_i32 dim 1 : vector<8x256xf32>, i32 -> vector<8x256xf32>
    %c0_3 = arith.constant 0 : index
    %c0_4 = arith.constant 0 : index
    %c0_5 = arith.constant 0 : index
    %5 = vector.load %arg0[%c0_3, %c0_4, %c0_5] : memref<9x8x256xf32, #tpu.memory_space<vmem>>, vector<1x8x256xf32>
    %6 = vector.shape_cast %5 : vector<1x8x256xf32> to vector<8x256xf32>
    %7 = arith.mulf %4, %6 : vector<8x256xf32>
    %8 = arith.addf %3, %7 : vector<8x256xf32>
    %c16_i32 = arith.constant 16 : i32
    %9 = tpu.dynamic_rotate %0 by %c16_i32 dim 1 : vector<8x256xf32>, i32 -> vector<8x256xf32>
    %c1 = arith.constant 1 : index
    %c0_6 = arith.constant 0 : index
    %c0_7 = arith.constant 0 : index
    %10 = vector.load %arg0[%c1, %c0_6, %c0_7] : memref<9x8x256xf32, #tpu.memory_space<vmem>>, vector<1x8x256xf32>
    %11 = vector.shape_cast %10 : vector<1x8x256xf32> to vector<8x256xf32>
    %12 = arith.mulf %9, %11 : vector<8x256xf32>
    %13 = arith.addf %8, %12 : vector<8x256xf32>
    %c15_i32 = arith.constant 15 : i32
    %14 = tpu.dynamic_rotate %0 by %c15_i32 dim 1 : vector<8x256xf32>, i32 -> vector<8x256xf32>
    %c2 = arith.constant 2 : index
    %c0_8 = arith.constant 0 : index
    %c0_9 = arith.constant 0 : index
    %15 = vector.load %arg0[%c2, %c0_8, %c0_9] : memref<9x8x256xf32, #tpu.memory_space<vmem>>, vector<1x8x256xf32>
    %16 = vector.shape_cast %15 : vector<1x8x256xf32> to vector<8x256xf32>
    %17 = arith.mulf %14, %16 : vector<8x256xf32>
    %18 = arith.addf %13, %17 : vector<8x256xf32>
    %c1_i32 = arith.constant 1 : i32
    %19 = tpu.dynamic_rotate %0 by %c1_i32 dim 1 : vector<8x256xf32>, i32 -> vector<8x256xf32>
    %c3 = arith.constant 3 : index
    %c0_10 = arith.constant 0 : index
    %c0_11 = arith.constant 0 : index
    %20 = vector.load %arg0[%c3, %c0_10, %c0_11] : memref<9x8x256xf32, #tpu.memory_space<vmem>>, vector<1x8x256xf32>
    %21 = vector.shape_cast %20 : vector<1x8x256xf32> to vector<8x256xf32>
    %22 = arith.mulf %19, %21 : vector<8x256xf32>
    %23 = arith.addf %18, %22 : vector<8x256xf32>
    %c255_i32 = arith.constant 255 : i32
    %24 = tpu.dynamic_rotate %0 by %c255_i32 dim 1 : vector<8x256xf32>, i32 -> vector<8x256xf32>
    %c5 = arith.constant 5 : index
    %c0_12 = arith.constant 0 : index
    %c0_13 = arith.constant 0 : index
    %25 = vector.load %arg0[%c5, %c0_12, %c0_13] : memref<9x8x256xf32, #tpu.memory_space<vmem>>, vector<1x8x256xf32>
    %26 = vector.shape_cast %25 : vector<1x8x256xf32> to vector<8x256xf32>
    %27 = arith.mulf %24, %26 : vector<8x256xf32>
    %28 = arith.addf %23, %27 : vector<8x256xf32>
    %c241_i32 = arith.constant 241 : i32
    %29 = tpu.dynamic_rotate %0 by %c241_i32 dim 1 : vector<8x256xf32>, i32 -> vector<8x256xf32>
    %c6 = arith.constant 6 : index
    %c0_14 = arith.constant 0 : index
    %c0_15 = arith.constant 0 : index
    %30 = vector.load %arg0[%c6, %c0_14, %c0_15] : memref<9x8x256xf32, #tpu.memory_space<vmem>>, vector<1x8x256xf32>
    %31 = vector.shape_cast %30 : vector<1x8x256xf32> to vector<8x256xf32>
    %32 = arith.mulf %29, %31 : vector<8x256xf32>
    %33 = arith.addf %28, %32 : vector<8x256xf32>
    %c240_i32 = arith.constant 240 : i32
    %34 = tpu.dynamic_rotate %0 by %c240_i32 dim 1 : vector<8x256xf32>, i32 -> vector<8x256xf32>
    %c7 = arith.constant 7 : index
    %c0_16 = arith.constant 0 : index
    %c0_17 = arith.constant 0 : index
    %35 = vector.load %arg0[%c7, %c0_16, %c0_17] : memref<9x8x256xf32, #tpu.memory_space<vmem>>, vector<1x8x256xf32>
    %36 = vector.shape_cast %35 : vector<1x8x256xf32> to vector<8x256xf32>
    %37 = arith.mulf %34, %36 : vector<8x256xf32>
    %38 = arith.addf %33, %37 : vector<8x256xf32>
    %c239_i32 = arith.constant 239 : i32
    %39 = tpu.dynamic_rotate %0 by %c239_i32 dim 1 : vector<8x256xf32>, i32 -> vector<8x256xf32>
    %c8 = arith.constant 8 : index
    %c0_18 = arith.constant 0 : index
    %c0_19 = arith.constant 0 : index
    %40 = vector.load %arg0[%c8, %c0_18, %c0_19] : memref<9x8x256xf32, #tpu.memory_space<vmem>>, vector<1x8x256xf32>
    %41 = vector.shape_cast %40 : vector<1x8x256xf32> to vector<8x256xf32>
    %42 = arith.mulf %39, %41 : vector<8x256xf32>
    %43 = arith.addf %38, %42 : vector<8x256xf32>
    %c0_20 = arith.constant 0 : index
    %c0_21 = arith.constant 0 : index
    %44 = vector.load %arg1[%c0_20, %c0_21] : memref<8x4xf32, #tpu.memory_space<vmem>>, vector<8x4xf32>
    %c0_22 = arith.constant 0 : index
    %c0_23 = arith.constant 0 : index
    %45 = vector.load %arg2[%c0_22, %c0_23] : memref<8x1xf32, #tpu.memory_space<vmem>>, vector<8x1xf32>
    %c0_24 = arith.constant 0 : index
    %c0_25 = arith.constant 0 : index
    %46 = vector.load %arg3[%c0_24, %c0_25] : memref<4x8xf32, #tpu.memory_space<vmem>>, vector<4x8xf32>
    %47 = vector.extract_strided_slice %43 {offsets = [0, 0], sizes = [1, 256], strides = [1, 1]} : vector<8x256xf32> to vector<1x256xf32>
    %48 = vector.shape_cast %47 : vector<1x256xf32> to vector<1x256xf32>
    %49 = vector.broadcast %48 : vector<1x256xf32> to vector<8x256xf32>
    %50 = vector.extract_strided_slice %44 {offsets = [0, 0], sizes = [8, 1], strides = [1, 1]} : vector<8x4xf32> to vector<8x1xf32>
    %51 = vector.broadcast %50 : vector<8x1xf32> to vector<8x256xf32>
    %52 = arith.mulf %49, %51 : vector<8x256xf32>
    %53 = vector.extract_strided_slice %43 {offsets = [1, 0], sizes = [1, 256], strides = [1, 1]} : vector<8x256xf32> to vector<1x256xf32>
    %54 = vector.shape_cast %53 : vector<1x256xf32> to vector<1x256xf32>
    %55 = vector.broadcast %54 : vector<1x256xf32> to vector<8x256xf32>
    %56 = vector.extract_strided_slice %44 {offsets = [0, 1], sizes = [8, 1], strides = [1, 1]} : vector<8x4xf32> to vector<8x1xf32>
    %57 = vector.broadcast %56 : vector<8x1xf32> to vector<8x256xf32>
    %58 = arith.mulf %55, %57 : vector<8x256xf32>
    %59 = arith.addf %52, %58 : vector<8x256xf32>
    %60 = vector.extract_strided_slice %43 {offsets = [2, 0], sizes = [1, 256], strides = [1, 1]} : vector<8x256xf32> to vector<1x256xf32>
    %61 = vector.shape_cast %60 : vector<1x256xf32> to vector<1x256xf32>
    %62 = vector.broadcast %61 : vector<1x256xf32> to vector<8x256xf32>
    %63 = vector.extract_strided_slice %44 {offsets = [0, 2], sizes = [8, 1], strides = [1, 1]} : vector<8x4xf32> to vector<8x1xf32>
    %64 = vector.broadcast %63 : vector<8x1xf32> to vector<8x256xf32>
    %65 = arith.mulf %62, %64 : vector<8x256xf32>
    %66 = arith.addf %59, %65 : vector<8x256xf32>
    %67 = vector.extract_strided_slice %43 {offsets = [3, 0], sizes = [1, 256], strides = [1, 1]} : vector<8x256xf32> to vector<1x256xf32>
    %68 = vector.shape_cast %67 : vector<1x256xf32> to vector<1x256xf32>
    %69 = vector.broadcast %68 : vector<1x256xf32> to vector<8x256xf32>
    %70 = vector.extract_strided_slice %44 {offsets = [0, 3], sizes = [8, 1], strides = [1, 1]} : vector<8x4xf32> to vector<8x1xf32>
    %71 = vector.broadcast %70 : vector<8x1xf32> to vector<8x256xf32>
    %72 = arith.mulf %69, %71 : vector<8x256xf32>
    %73 = arith.addf %66, %72 : vector<8x256xf32>
    %74 = vector.broadcast %45 : vector<8x1xf32> to vector<8x256xf32>
    %75 = arith.addf %73, %74 : vector<8x256xf32>
    %cst = arith.constant 0.000000e+00 : f32
    %76 = vector.broadcast %cst : f32 to vector<8x256xf32>
    %77 = arith.maximumf %75, %76 : vector<8x256xf32>
    %78 = vector.extract_strided_slice %77 {offsets = [0, 0], sizes = [1, 256], strides = [1, 1]} : vector<8x256xf32> to vector<1x256xf32>
    %79 = vector.shape_cast %78 : vector<1x256xf32> to vector<1x256xf32>
    %80 = vector.broadcast %79 : vector<1x256xf32> to vector<4x256xf32>
    %81 = vector.extract_strided_slice %46 {offsets = [0, 0], sizes = [4, 1], strides = [1, 1]} : vector<4x8xf32> to vector<4x1xf32>
    %82 = vector.broadcast %81 : vector<4x1xf32> to vector<4x256xf32>
    %83 = arith.mulf %80, %82 : vector<4x256xf32>
    %84 = vector.extract_strided_slice %77 {offsets = [1, 0], sizes = [1, 256], strides = [1, 1]} : vector<8x256xf32> to vector<1x256xf32>
    %85 = vector.shape_cast %84 : vector<1x256xf32> to vector<1x256xf32>
    %86 = vector.broadcast %85 : vector<1x256xf32> to vector<4x256xf32>
    %87 = vector.extract_strided_slice %46 {offsets = [0, 1], sizes = [4, 1], strides = [1, 1]} : vector<4x8xf32> to vector<4x1xf32>
    %88 = vector.broadcast %87 : vector<4x1xf32> to vector<4x256xf32>
    %89 = arith.mulf %86, %88 : vector<4x256xf32>
    %90 = arith.addf %83, %89 : vector<4x256xf32>
    %91 = vector.extract_strided_slice %77 {offsets = [2, 0], sizes = [1, 256], strides = [1, 1]} : vector<8x256xf32> to vector<1x256xf32>
    %92 = vector.shape_cast %91 : vector<1x256xf32> to vector<1x256xf32>
    %93 = vector.broadcast %92 : vector<1x256xf32> to vector<4x256xf32>
    %94 = vector.extract_strided_slice %46 {offsets = [0, 2], sizes = [4, 1], strides = [1, 1]} : vector<4x8xf32> to vector<4x1xf32>
    %95 = vector.broadcast %94 : vector<4x1xf32> to vector<4x256xf32>
    %96 = arith.mulf %93, %95 : vector<4x256xf32>
    %97 = arith.addf %90, %96 : vector<4x256xf32>
    %98 = vector.extract_strided_slice %77 {offsets = [3, 0], sizes = [1, 256], strides = [1, 1]} : vector<8x256xf32> to vector<1x256xf32>
    %99 = vector.shape_cast %98 : vector<1x256xf32> to vector<1x256xf32>
    %100 = vector.broadcast %99 : vector<1x256xf32> to vector<4x256xf32>
    %101 = vector.extract_strided_slice %46 {offsets = [0, 3], sizes = [4, 1], strides = [1, 1]} : vector<4x8xf32> to vector<4x1xf32>
    %102 = vector.broadcast %101 : vector<4x1xf32> to vector<4x256xf32>
    %103 = arith.mulf %100, %102 : vector<4x256xf32>
    %104 = arith.addf %97, %103 : vector<4x256xf32>
    %105 = vector.extract_strided_slice %77 {offsets = [4, 0], sizes = [1, 256], strides = [1, 1]} : vector<8x256xf32> to vector<1x256xf32>
    %106 = vector.shape_cast %105 : vector<1x256xf32> to vector<1x256xf32>
    %107 = vector.broadcast %106 : vector<1x256xf32> to vector<4x256xf32>
    %108 = vector.extract_strided_slice %46 {offsets = [0, 4], sizes = [4, 1], strides = [1, 1]} : vector<4x8xf32> to vector<4x1xf32>
    %109 = vector.broadcast %108 : vector<4x1xf32> to vector<4x256xf32>
    %110 = arith.mulf %107, %109 : vector<4x256xf32>
    %111 = arith.addf %104, %110 : vector<4x256xf32>
    %112 = vector.extract_strided_slice %77 {offsets = [5, 0], sizes = [1, 256], strides = [1, 1]} : vector<8x256xf32> to vector<1x256xf32>
    %113 = vector.shape_cast %112 : vector<1x256xf32> to vector<1x256xf32>
    %114 = vector.broadcast %113 : vector<1x256xf32> to vector<4x256xf32>
    %115 = vector.extract_strided_slice %46 {offsets = [0, 5], sizes = [4, 1], strides = [1, 1]} : vector<4x8xf32> to vector<4x1xf32>
    %116 = vector.broadcast %115 : vector<4x1xf32> to vector<4x256xf32>
    %117 = arith.mulf %114, %116 : vector<4x256xf32>
    %118 = arith.addf %111, %117 : vector<4x256xf32>
    %119 = vector.extract_strided_slice %77 {offsets = [6, 0], sizes = [1, 256], strides = [1, 1]} : vector<8x256xf32> to vector<1x256xf32>
    %120 = vector.shape_cast %119 : vector<1x256xf32> to vector<1x256xf32>
    %121 = vector.broadcast %120 : vector<1x256xf32> to vector<4x256xf32>
    %122 = vector.extract_strided_slice %46 {offsets = [0, 6], sizes = [4, 1], strides = [1, 1]} : vector<4x8xf32> to vector<4x1xf32>
    %123 = vector.broadcast %122 : vector<4x1xf32> to vector<4x256xf32>
    %124 = arith.mulf %121, %123 : vector<4x256xf32>
    %125 = arith.addf %118, %124 : vector<4x256xf32>
    %126 = vector.extract_strided_slice %77 {offsets = [7, 0], sizes = [1, 256], strides = [1, 1]} : vector<8x256xf32> to vector<1x256xf32>
    %127 = vector.shape_cast %126 : vector<1x256xf32> to vector<1x256xf32>
    %128 = vector.broadcast %127 : vector<1x256xf32> to vector<4x256xf32>
    %129 = vector.extract_strided_slice %46 {offsets = [0, 7], sizes = [4, 1], strides = [1, 1]} : vector<4x8xf32> to vector<4x1xf32>
    %130 = vector.broadcast %129 : vector<4x1xf32> to vector<4x256xf32>
    %131 = arith.mulf %128, %130 : vector<4x256xf32>
    %132 = arith.addf %125, %131 : vector<4x256xf32>
    %133 = vector.extract_strided_slice %43 {offsets = [4, 0], sizes = [1, 256], strides = [1, 1]} : vector<8x256xf32> to vector<1x256xf32>
    %134 = vector.shape_cast %133 : vector<1x256xf32> to vector<1x256xf32>
    %135 = vector.broadcast %134 : vector<1x256xf32> to vector<8x256xf32>
    %136 = vector.extract_strided_slice %44 {offsets = [0, 0], sizes = [8, 1], strides = [1, 1]} : vector<8x4xf32> to vector<8x1xf32>
    %137 = vector.broadcast %136 : vector<8x1xf32> to vector<8x256xf32>
    %138 = arith.mulf %135, %137 : vector<8x256xf32>
    %139 = vector.extract_strided_slice %43 {offsets = [5, 0], sizes = [1, 256], strides = [1, 1]} : vector<8x256xf32> to vector<1x256xf32>
    %140 = vector.shape_cast %139 : vector<1x256xf32> to vector<1x256xf32>
    %141 = vector.broadcast %140 : vector<1x256xf32> to vector<8x256xf32>
    %142 = vector.extract_strided_slice %44 {offsets = [0, 1], sizes = [8, 1], strides = [1, 1]} : vector<8x4xf32> to vector<8x1xf32>
    %143 = vector.broadcast %142 : vector<8x1xf32> to vector<8x256xf32>
    %144 = arith.mulf %141, %143 : vector<8x256xf32>
    %145 = arith.addf %138, %144 : vector<8x256xf32>
    %146 = vector.extract_strided_slice %43 {offsets = [6, 0], sizes = [1, 256], strides = [1, 1]} : vector<8x256xf32> to vector<1x256xf32>
    %147 = vector.shape_cast %146 : vector<1x256xf32> to vector<1x256xf32>
    %148 = vector.broadcast %147 : vector<1x256xf32> to vector<8x256xf32>
    %149 = vector.extract_strided_slice %44 {offsets = [0, 2], sizes = [8, 1], strides = [1, 1]} : vector<8x4xf32> to vector<8x1xf32>
    %150 = vector.broadcast %149 : vector<8x1xf32> to vector<8x256xf32>
    %151 = arith.mulf %148, %150 : vector<8x256xf32>
    %152 = arith.addf %145, %151 : vector<8x256xf32>
    %153 = vector.extract_strided_slice %43 {offsets = [7, 0], sizes = [1, 256], strides = [1, 1]} : vector<8x256xf32> to vector<1x256xf32>
    %154 = vector.shape_cast %153 : vector<1x256xf32> to vector<1x256xf32>
    %155 = vector.broadcast %154 : vector<1x256xf32> to vector<8x256xf32>
    %156 = vector.extract_strided_slice %44 {offsets = [0, 3], sizes = [8, 1], strides = [1, 1]} : vector<8x4xf32> to vector<8x1xf32>
    %157 = vector.broadcast %156 : vector<8x1xf32> to vector<8x256xf32>
    %158 = arith.mulf %155, %157 : vector<8x256xf32>
    %159 = arith.addf %152, %158 : vector<8x256xf32>
    %160 = vector.broadcast %45 : vector<8x1xf32> to vector<8x256xf32>
    %161 = arith.addf %159, %160 : vector<8x256xf32>
    %cst_26 = arith.constant 0.000000e+00 : f32
    %162 = vector.broadcast %cst_26 : f32 to vector<8x256xf32>
    %163 = arith.maximumf %161, %162 : vector<8x256xf32>
    %164 = vector.extract_strided_slice %163 {offsets = [0, 0], sizes = [1, 256], strides = [1, 1]} : vector<8x256xf32> to vector<1x256xf32>
    %165 = vector.shape_cast %164 : vector<1x256xf32> to vector<1x256xf32>
    %166 = vector.broadcast %165 : vector<1x256xf32> to vector<4x256xf32>
    %167 = vector.extract_strided_slice %46 {offsets = [0, 0], sizes = [4, 1], strides = [1, 1]} : vector<4x8xf32> to vector<4x1xf32>
    %168 = vector.broadcast %167 : vector<4x1xf32> to vector<4x256xf32>
    %169 = arith.mulf %166, %168 : vector<4x256xf32>
    %170 = vector.extract_strided_slice %163 {offsets = [1, 0], sizes = [1, 256], strides = [1, 1]} : vector<8x256xf32> to vector<1x256xf32>
    %171 = vector.shape_cast %170 : vector<1x256xf32> to vector<1x256xf32>
    %172 = vector.broadcast %171 : vector<1x256xf32> to vector<4x256xf32>
    %173 = vector.extract_strided_slice %46 {offsets = [0, 1], sizes = [4, 1], strides = [1, 1]} : vector<4x8xf32> to vector<4x1xf32>
    %174 = vector.broadcast %173 : vector<4x1xf32> to vector<4x256xf32>
    %175 = arith.mulf %172, %174 : vector<4x256xf32>
    %176 = arith.addf %169, %175 : vector<4x256xf32>
    %177 = vector.extract_strided_slice %163 {offsets = [2, 0], sizes = [1, 256], strides = [1, 1]} : vector<8x256xf32> to vector<1x256xf32>
    %178 = vector.shape_cast %177 : vector<1x256xf32> to vector<1x256xf32>
    %179 = vector.broadcast %178 : vector<1x256xf32> to vector<4x256xf32>
    %180 = vector.extract_strided_slice %46 {offsets = [0, 2], sizes = [4, 1], strides = [1, 1]} : vector<4x8xf32> to vector<4x1xf32>
    %181 = vector.broadcast %180 : vector<4x1xf32> to vector<4x256xf32>
    %182 = arith.mulf %179, %181 : vector<4x256xf32>
    %183 = arith.addf %176, %182 : vector<4x256xf32>
    %184 = vector.extract_strided_slice %163 {offsets = [3, 0], sizes = [1, 256], strides = [1, 1]} : vector<8x256xf32> to vector<1x256xf32>
    %185 = vector.shape_cast %184 : vector<1x256xf32> to vector<1x256xf32>
    %186 = vector.broadcast %185 : vector<1x256xf32> to vector<4x256xf32>
    %187 = vector.extract_strided_slice %46 {offsets = [0, 3], sizes = [4, 1], strides = [1, 1]} : vector<4x8xf32> to vector<4x1xf32>
    %188 = vector.broadcast %187 : vector<4x1xf32> to vector<4x256xf32>
    %189 = arith.mulf %186, %188 : vector<4x256xf32>
    %190 = arith.addf %183, %189 : vector<4x256xf32>
    %191 = vector.extract_strided_slice %163 {offsets = [4, 0], sizes = [1, 256], strides = [1, 1]} : vector<8x256xf32> to vector<1x256xf32>
    %192 = vector.shape_cast %191 : vector<1x256xf32> to vector<1x256xf32>
    %193 = vector.broadcast %192 : vector<1x256xf32> to vector<4x256xf32>
    %194 = vector.extract_strided_slice %46 {offsets = [0, 4], sizes = [4, 1], strides = [1, 1]} : vector<4x8xf32> to vector<4x1xf32>
    %195 = vector.broadcast %194 : vector<4x1xf32> to vector<4x256xf32>
    %196 = arith.mulf %193, %195 : vector<4x256xf32>
    %197 = arith.addf %190, %196 : vector<4x256xf32>
    %198 = vector.extract_strided_slice %163 {offsets = [5, 0], sizes = [1, 256], strides = [1, 1]} : vector<8x256xf32> to vector<1x256xf32>
    %199 = vector.shape_cast %198 : vector<1x256xf32> to vector<1x256xf32>
    %200 = vector.broadcast %199 : vector<1x256xf32> to vector<4x256xf32>
    %201 = vector.extract_strided_slice %46 {offsets = [0, 5], sizes = [4, 1], strides = [1, 1]} : vector<4x8xf32> to vector<4x1xf32>
    %202 = vector.broadcast %201 : vector<4x1xf32> to vector<4x256xf32>
    %203 = arith.mulf %200, %202 : vector<4x256xf32>
    %204 = arith.addf %197, %203 : vector<4x256xf32>
    %205 = vector.extract_strided_slice %163 {offsets = [6, 0], sizes = [1, 256], strides = [1, 1]} : vector<8x256xf32> to vector<1x256xf32>
    %206 = vector.shape_cast %205 : vector<1x256xf32> to vector<1x256xf32>
    %207 = vector.broadcast %206 : vector<1x256xf32> to vector<4x256xf32>
    %208 = vector.extract_strided_slice %46 {offsets = [0, 6], sizes = [4, 1], strides = [1, 1]} : vector<4x8xf32> to vector<4x1xf32>
    %209 = vector.broadcast %208 : vector<4x1xf32> to vector<4x256xf32>
    %210 = arith.mulf %207, %209 : vector<4x256xf32>
    %211 = arith.addf %204, %210 : vector<4x256xf32>
    %212 = vector.extract_strided_slice %163 {offsets = [7, 0], sizes = [1, 256], strides = [1, 1]} : vector<8x256xf32> to vector<1x256xf32>
    %213 = vector.shape_cast %212 : vector<1x256xf32> to vector<1x256xf32>
    %214 = vector.broadcast %213 : vector<1x256xf32> to vector<4x256xf32>
    %215 = vector.extract_strided_slice %46 {offsets = [0, 7], sizes = [4, 1], strides = [1, 1]} : vector<4x8xf32> to vector<4x1xf32>
    %216 = vector.broadcast %215 : vector<4x1xf32> to vector<4x256xf32>
    %217 = arith.mulf %214, %216 : vector<4x256xf32>
    %218 = arith.addf %211, %217 : vector<4x256xf32>
    %219 = tpu.concatenate %132, %218 in 0 : vector<4x256xf32>, vector<4x256xf32> -> vector<8x256xf32>
    %c0_27 = arith.constant 0 : index
    %c0_28 = arith.constant 0 : index
    %220 = vector.load %arg4[%c0_27, %c0_28] : memref<8x1xf32, #tpu.memory_space<vmem>>, vector<8x1xf32>
    %221 = vector.broadcast %220 : vector<8x1xf32> to vector<8x256xf32>
    %222 = arith.addf %219, %221 : vector<8x256xf32>
    %223 = arith.addf %222, %0 : vector<8x256xf32>
    %c0_29 = arith.constant 0 : index
    %c0_30 = arith.constant 0 : index
    %224 = vector.load %arg6[%c0_29, %c0_30] : memref<8x256xf32, #tpu.memory_space<vmem>>, vector<8x256xf32>
    tpu.vector_store %arg6[%c0_29, %c0_30], %223 {strides = array<i32>} : memref<8x256xf32, #tpu.memory_space<vmem>>, vector<8x256xf32>,
    return
  }
}

</mosaic_0001>

<bundles_post_ra>
// kernel: block_forward.1
= control target key start
LH: loop header
LB: loop body
LE: loop exit
PB: predicated region body
PF: predicated region fallthrough
CT: control target
= control target key end

     0   :  { %v560_v1 = vmov 1   ;;  %v561_v2 = vmov 0   ;;  %s562_s23 = smov 16   ;;  %s563_s24 = smov 17   ;;  %v570_v5 = vmov 2   ;;  %v571_v6 = vmov 3   ;;  %s837_s5 = inlined_call_operand.vmem [shape: f32[8,256], index: 5, kind: input, shape index: {}]   ;;  %s838_s1 = inlined_call_operand.vmem [shape: f32[8,4], index: 1, kind: input, shape index: {}]   ;;  %s839_s2 = inlined_call_operand.vmem [shape: f32[8,1], index: 2, kind: input, shape index: {}]   ;;  %s840_s3 = inlined_call_operand.vmem [shape: f32[4,8], index: 3, kind: input, shape index: {}]   ;;  %s841_s4 = inlined_call_operand.vmem [shape: f32[8,1], index: 4, kind: input, shape index: {}]   ;;  %s842_s0 = inlined_call_operand.vmem [shape: f32[9,8,256], index: 0, kind: input, shape index: {}]   ;;  %s843_s6 = inlined_call_operand.vmem [shape: f32[8,256], index: 6, kind: output, shape index: {}]  }
   0x1   :  { %v614_v0 = vld [vmem:[%s837_s5] sm:$0xff]  ;;  %547 = vset.pattern.permute.xlu1 %v560_v1  ;;  %546 = vset.pattern.permute.xlu0 %v561_v2  ;;  %v622_v3 = vld [vmem:[%s837_s5 + $0x8] sm:$0xff]  ;;  %s564_s27 = smov 15   ;;  %s565_s28 = smov 1   ;;  %v572_v9 = vmov 4   ;;  %v573_v10 = vmov 7   ;;  %v34_v16 = vlaneseq }
   0x2   :  { %45 = vrot.lane.b32.xlu1 %v614_v0, %s562_s23  ;;  %30 = vrot.lane.b32.xlu0 %v614_v0, %s563_s24  ;;  %s566_s29 = smov 127   ;;  %s567_s5 = smov 113   ;;  %v143_v4 = vld [vmem:[%s838_s1] sm:$0xff]  ;;  %v574_v11 = vmov 5   ;;  %v575_v12 = vmov 6   ;;  %v515_v23 = vld [vmem:[%s842_s0 + $0x48] sm:$0xff] }
   0x3   :  { %s568_s30 = smov 112   ;;  %s569_s7 = smov 111   ;;  %v144_v7 = vld [vmem:[%s839_s2] sm:$0xff]  ;;  %v654_v17 = vand.u32 127, %v34_v16  ;;  %v40_v27 = vld [vmem:[%s842_s0 + $0x8] sm:$0xff]  ;;  %v29_v31 = vmul.f32 %v515_v23, %v622_v3  ;;  %v516_v38 = vld [vmem:[%s842_s0 + $0x10] sm:$0xff] }
   0x4   :  { %v145_v8 = vld [vmem:[%s840_s3] sm:$0xf]  ;;  %v517_v39 = vld [vmem:[%s842_s0 + $0x18] sm:$0xff]  ;;  %v519_v45 = vld [vmem:[%s842_s0 + $0x28] sm:$0xff]  ;;  %vm495_vm8 = vcmask 1043456  }
   0x5   :  { %v498_v13 = vld [vmem:[%s841_s4] sm:$0xff]  ;;  %vm36_vm0 = vcmp.lt.s32.totalorder %v654_v17, 17  ;;  %vm49_vm1 = vcmp.lt.s32.totalorder %v654_v17, 16  ;;  %vm63_vm2 = vcmp.lt.s32.totalorder %v654_v17, 15  ;;  %vm77_vm3 = vcmp.lt.s32.totalorder %v654_v17, 1  ;;  %v520_v52 = vld [vmem:[%s842_s0 + $0x30] sm:$0xff] }
   0x6   :  { %47 = vrot.lane.b32.xlu1 %v622_v3, %s562_s23  ;;  %32 = vrot.lane.b32.xlu0 %v622_v3, %s563_s24  ;;  %v514_v22 = vld [vmem:[%s842_s0 + $0x40] sm:$0xff]  ;;  %vm91_vm4 = vcmp.lt.s32.totalorder %v654_v17, 127  ;;  %v521_v53 = vld [vmem:[%s842_s0 + $0x38] sm:$0xff]  ;;  %vm105_vm5 = vcmp.lt.s32.totalorder %v654_v17, 113  ;;  %vm119_vm6 = vcmp.lt.s32.totalorder %v654_v17, 112  ;;  %vm133_vm7 = vcmp.lt.s32.totalorder %v654_v17, 111 }
   0x7   :  { %v39_v26 = vld [vmem:[%s842_s0] sm:$0xff]  ;;  %v28_v30 = vmul.f32 %v514_v22, %v614_v0  ;;  %v522_v60 = vld [vmem:[%s842_s0 + $0x50] sm:$0xff]  ;;  %v523_v61 = vld [vmem:[%s842_s0 + $0x58] sm:$0xff] }
   0x8   :  { %v518_v44 = vld [vmem:[%s842_s0 + $0x20] sm:$0xff] }
   0xa   :  { %61 = vrot.lane.b32.xlu1 %v622_v3, %s564_s27  ;;  %59 = vrot.lane.b32.xlu0 %v614_v0, %s564_s27 }
   0xe   :  { %75 = vrot.lane.b32.xlu1 %v622_v3, %s565_s28  ;;  %73 = vrot.lane.b32.xlu0 %v614_v0, %s565_s28 }
  0x12   :  { %89 = vrot.lane.b32.xlu1 %v622_v3, %s566_s29  ;;  %87 = vrot.lane.b32.xlu0 %v614_v0, %s566_s29 }
  0x16   :  { %103 = vrot.lane.b32.xlu1 %v622_v3, %s567_s5  ;;  %101 = vrot.lane.b32.xlu0 %v614_v0, %s567_s5 }
  0x1a   :  { %117 = vrot.lane.b32.xlu1 %v622_v3, %s568_s30  ;;  %115 = vrot.lane.b32.xlu0 %v614_v0, %s568_s30 }
  0x1e   :  { %131 = vrot.lane.b32.xlu1 %v622_v3, %s569_s7  ;;  %129 = vrot.lane.b32.xlu0 %v614_v0, %s569_s7 }
  0x22   :  { %170 = vperm.xlu1 %547, %v143_v4   ;;  %156 = vperm.xlu0 %546, %v143_v4  }
  0x26   :  { %548 = vset.pattern.permute.xlu1 %v570_v5  ;;  %549 = vset.pattern.permute.xlu0 %v571_v6 }
  0x27   :  { %186 = vperm.xlu1 %548, %v143_v4   ;;  %202 = vperm.xlu0 %549, %v143_v4  }
  0x2b   :  { %550 = vset.pattern.permute.xlu1 %v561_v2  ;;  %551 = vset.pattern.permute.xlu0 %v560_v1 }
  0x2c   :  { %211 = vperm.xlu1 %550, %v144_v7   ;;  %242 = vperm.xlu0 %551, %v145_v8   ;;  %v525_v7 = vld [vmem:[%s842_s0 + $0x68] sm:$0xff] }
  0x30   :  { %228 = vperm.xlu1 %550, %v145_v8   ;;  %554 = vset.pattern.permute.xlu0 %v572_v9 }
  0x31   :  { %290 = vperm.xlu0 %554, %v145_v8  }
  0x34   :  { %552 = vset.pattern.permute.xlu1 %v570_v5 }
  0x35   :  { %258 = vperm.xlu1 %552, %v145_v8   ;;  %557 = vset.pattern.permute.xlu0 %v573_v10 }
  0x36   :  { %338 = vperm.xlu0 %557, %v145_v8  }
  0x39   :  { %553 = vset.pattern.permute.xlu1 %v571_v6  ;;  %v524_v6 = vld [vmem:[%s842_s0 + $0x60] sm:$0xff] }
  0x3a   :  { %274 = vperm.xlu1 %553, %v145_v8   ;;  %559 = vset.pattern.permute.xlu0 %v561_v2 }
  0x3e   :  { %555 = vset.pattern.permute.xlu1 %v574_v11 }
  0x3f   :  { %306 = vperm.xlu1 %555, %v145_v8  }
  0x43   :  { %556 = vset.pattern.permute.xlu1 %v575_v12 }
  0x44   :  { %322 = vperm.xlu1 %556, %v145_v8  }
  0x48   :  { %558 = vset.pattern.permute.xlu1 %v561_v2 }
  0x49   :  { %501 = vperm.xlu1 %558, %v498_v13  }
  0x74   :  { %v46_v14 = vpop.permute.xlu1 %45  ;;  %v31_v15 = vpop.permute.xlu0 %30 }
  0x78   :  { %v48_v18 = vpop.permute.xlu1 %47  ;;  %v33_v19 = vpop.permute.xlu0 %32 }
  0x79   :  { %v37_v24 = vsel %vm36_vm0, %v31_v15, %v33_v19  ;;  %v38_v25 = vsel %vm36_vm0, %v33_v19, %v31_v15  ;;  %v50_v36 = vsel %vm49_vm1, %v46_v14, %v48_v18  ;;  %v51_v37 = vsel %vm49_vm1, %v48_v18, %v46_v14  ;;  %v526_v14 = vld [vmem:[%s842_s0 + $0x70] sm:$0xff]  ;;  %v527_v15 = vld [vmem:[%s842_s0 + $0x78] sm:$0xff] }
  0x7a   :  { %v41_v32 = vmul.f32 %v39_v26, %v38_v25  ;;  %v42_v33 = vmul.f32 %v40_v27, %v37_v24  ;;  %v55_v46 = vmul.f32 %v516_v38, %v51_v37  ;;  %v56_v47 = vmul.f32 %v517_v39, %v50_v36  ;;  %v528_v26 = vld [vmem:[%s842_s0 + $0x80] sm:$0xff]  ;;  %v529_v27 = vld [vmem:[%s842_s0 + $0x88] sm:$0xff] }
  0x7c   :  { %v62_v20 = vpop.permute.xlu1 %61  ;;  %v60_v21 = vpop.permute.xlu0 %59  ;;  %v43_v40 = vadd.f32 %v41_v32, %v28_v30  ;;  %v44_v41 = vadd.f32 %v42_v33, %v29_v31  ;;  %v147_v32 = vshrl.u32 %v34_v16, 7 }
  0x7d   :  { %v64_v42 = vsel %vm63_vm2, %v60_v21, %v62_v20  ;;  %v65_v43 = vsel %vm63_vm2, %v62_v20, %v60_v21 }
  0x7e   :  { %v57_v54 = vadd.f32 %v55_v46, %v43_v40  ;;  %v58_v55 = vadd.f32 %v56_v47, %v44_v41  ;;  %v69_v56 = vmul.f32 %v518_v44, %v65_v43  ;;  %v70_v57 = vmul.f32 %v519_v45, %v64_v42 }
  0x7f   :  { %v725_v40 = vsub.s32 1, %v147_v32  ;;  %v727_v41 = vsub.s32 5, %v147_v32  ;;  %v729_v42 = vsub.s32 0, %v147_v32  ;;  %v731_v43 = vsub.s32 4, %v147_v32 }
  0x80   :  { %v76_v28 = vpop.permute.xlu1 %75  ;;  %v74_v29 = vpop.permute.xlu0 %73  ;;  %v71_v8 = vadd.f32 %v69_v56, %v57_v54  ;;  %v72_v9 = vadd.f32 %v70_v57, %v58_v55  ;;  %v733_v44 = vsub.s32 2, %v147_v32  ;;  %v735_v45 = vsub.s32 6, %v147_v32 }
  0x81   :  { %v78_v50 = vsel %vm77_vm3, %v74_v29, %v76_v28  ;;  %v79_v51 = vsel %vm77_vm3, %v76_v28, %v74_v29  ;;  %v737_v16 = vsub.s32 3, %v147_v32  ;;  %v739_v46 = vsub.s32 7, %v147_v32 }
  0x82   :  { %v83_v62 = vmul.f32 %v520_v52, %v79_v51  ;;  %v84_v63 = vmul.f32 %v521_v53, %v78_v50 }
  0x84   :  { %v90_v34 = vpop.permute.xlu1 %89  ;;  %v88_v35 = vpop.permute.xlu0 %87  ;;  %v85_v18 = vadd.f32 %v83_v62, %v71_v8  ;;  %v86_v19 = vadd.f32 %v84_v63, %v72_v9 }
  0x85   :  { %v92_v58 = vsel %vm91_vm4, %v88_v35, %v90_v34  ;;  %v93_v59 = vsel %vm91_vm4, %v90_v34, %v88_v35 }
  0x86   :  { %v97_v10 = vmul.f32 %v522_v60, %v92_v58  ;;  %v98_v11 = vmul.f32 %v523_v61, %v93_v59 }
  0x88   :  { %v104_v48 = vpop.permute.xlu1 %103  ;;  %v102_v49 = vpop.permute.xlu0 %101  ;;  %v99_v28 = vadd.f32 %v97_v10, %v85_v18  ;;  %v100_v29 = vadd.f32 %v98_v11, %v86_v19 }
  0x89   :  { %v106_v4 = vsel %vm105_vm5, %v102_v49, %v104_v48  ;;  %v107_v5 = vsel %vm105_vm5, %v104_v48, %v102_v49 }
  0x8a   :  { %v111_v20 = vmul.f32 %v524_v6, %v106_v4  ;;  %v112_v21 = vmul.f32 %v525_v7, %v107_v5 }
  0x8c   :  { %v118_v1 = vpop.permute.xlu1 %117  ;;  %v116_v2 = vpop.permute.xlu0 %115  ;;  %v113_v33 = vadd.f32 %v111_v20, %v99_v28  ;;  %v114_v34 = vadd.f32 %v112_v21, %v100_v29 }
  0x8d   :  { %v120_v12 = vsel %vm119_vm6, %v116_v2, %v118_v1  ;;  %v121_v13 = vsel %vm119_vm6, %v118_v1, %v116_v2 }
  0x8e   :  { %v125_v30 = vmul.f32 %v526_v14, %v120_v12  ;;  %v126_v31 = vmul.f32 %v527_v15, %v121_v13 }
  0x90   :  { %v132_v22 = vpop.permute.xlu1 %131  ;;  %v130_v23 = vpop.permute.xlu0 %129  ;;  %v127_v17 = vadd.f32 %v125_v30, %v113_v33  ;;  %v128_v37 = vadd.f32 %v126_v31, %v114_v34 }
  0x91   :  { %v134_v24 = vsel %vm133_vm7, %v130_v23, %v132_v22  ;;  %v135_v25 = vsel %vm133_vm7, %v132_v22, %v130_v23 }
  0x92   :  { %v139_v35 = vmul.f32 %v528_v26, %v134_v24  ;;  %v140_v36 = vmul.f32 %v529_v27, %v135_v25 }
  0x94   :  { %v141_v38 = vadd.f32 %v139_v35, %v127_v17  ;;  %v142_v39 = vadd.f32 %v140_v36, %v128_v37 }
  0x96   :  { %v164_v47 = vrot.slane %v141_v38, %v725_v40  ;;  %v168_v48 = vrot.slane %v142_v39, %v725_v40  ;;  %v358_v49 = vrot.slane %v141_v38, %v727_v41  ;;  %v362_v50 = vrot.slane %v142_v39, %v727_v41 }
  0x97   :  { %v149_v53 = vrot.slane %v141_v38, %v729_v42  ;;  %v153_v54 = vrot.slane %v142_v39, %v729_v42  ;;  %v348_v55 = vrot.slane %v141_v38, %v731_v43  ;;  %v352_v56 = vrot.slane %v142_v39, %v731_v43 }
  0x98   :  { %v180_v2 = vrot.slane %v141_v38, %v733_v44  ;;  %v184_v4 = vrot.slane %v142_v39, %v733_v44  ;;  %v370_v5 = vrot.slane %v141_v38, %v735_v45  ;;  %v374_v6 = vrot.slane %v142_v39, %v735_v45 }
  0x99   :  { %v196_v7 = vrot.slane %v141_v38, %v737_v16  ;;  %v200_v8 = vrot.slane %v142_v39, %v737_v16  ;;  %v382_v9 = vrot.slane %v141_v38, %v739_v46  ;;  %v386_v10 = vrot.slane %v142_v39, %v739_v46 }
  0x9d   :  { %v171_v51 = vpop.permute.xlu1 %170  ;;  %v157_v52 = vpop.permute.xlu0 %156 }
  0x9e   :  { %v173_v57 = vmul.f32 %v171_v51, %v164_v47  ;;  %v174_v58 = vmul.f32 %v171_v51, %v168_v48  ;;  %v363_v59 = vmul.f32 %v358_v49, %v171_v51  ;;  %v364_v60 = vmul.f32 %v362_v50, %v171_v51 }
  0x9f   :  { %v159_v61 = vmul.f32 %v157_v52, %v149_v53  ;;  %v160_v62 = vmul.f32 %v157_v52, %v153_v54  ;;  %v353_v63 = vmul.f32 %v348_v55, %v157_v52  ;;  %v354_v1 = vmul.f32 %v352_v56, %v157_v52 }
  0xa1   :  { %v175_v11 = vadd.f32 %v173_v57, %v159_v61  ;;  %v176_v12 = vadd.f32 %v174_v58, %v160_v62  ;;  %v365_v13 = vadd.f32 %v363_v59, %v353_v63  ;;  %v366_v14 = vadd.f32 %v364_v60, %v354_v1 }
  0xa2   :  { %v187_v15 = vpop.permute.xlu1 %186  ;;  %v203_v18 = vpop.permute.xlu0 %202 }
  0xa3   :  { %v189_v19 = vmul.f32 %v187_v15, %v180_v2  ;;  %v190_v20 = vmul.f32 %v187_v15, %v184_v4  ;;  %v375_v21 = vmul.f32 %v370_v5, %v187_v15  ;;  %v376_v22 = vmul.f32 %v374_v6, %v187_v15 }
  0xa4   :  { %v205_v23 = vmul.f32 %v203_v18, %v196_v7  ;;  %v206_v24 = vmul.f32 %v203_v18, %v200_v8  ;;  %v387_v25 = vmul.f32 %v382_v9, %v203_v18  ;;  %v388_v26 = vmul.f32 %v386_v10, %v203_v18 }
  0xa5   :  { %v191_v27 = vadd.f32 %v189_v19, %v175_v11  ;;  %v192_v28 = vadd.f32 %v190_v20, %v176_v12  ;;  %v377_v29 = vadd.f32 %v375_v21, %v365_v13  ;;  %v378_v30 = vadd.f32 %v376_v22, %v366_v14 }
  0xa7   :  { %v212_v31 = vpop.permute.xlu1 %211  ;;  %v207_v32 = vadd.f32 %v205_v23, %v191_v27  ;;  %v208_v33 = vadd.f32 %v206_v24, %v192_v28  ;;  %v389_v34 = vadd.f32 %v387_v25, %v377_v29  ;;  %v390_v35 = vadd.f32 %v388_v26, %v378_v30  ;;  %v243_v51 = vpop.permute.xlu0 %242 }
  0xa9   :  { %v214_v36 = vadd.f32 %v212_v31, %v207_v32  ;;  %v215_v17 = vadd.f32 %v212_v31, %v208_v33  ;;  %v391_v37 = vadd.f32 %v389_v34, %v212_v31  ;;  %v392_v38 = vadd.f32 %v390_v35, %v212_v31 }
  0xab   :  { %v757_v39 = vmax.f32 %v214_v36, 0.0  ;;  %v759_v47 = vmax.f32 %v215_v17, 0.0  ;;  %v761_v48 = vmax.f32 %v391_v37, 0.0  ;;  %v763_v49 = vmax.f32 %v392_v38, 0.0  ;;  %v229_v50 = vpop.permute.xlu1 %228 }
  0xac   :  { %v291_v8 = vpop.permute.xlu0 %290 }
  0xad   :  { %v236_v52 = vrot.slane %v757_v39, %v725_v40  ;;  %v240_v53 = vrot.slane %v759_v47, %v725_v40  ;;  %v408_v54 = vrot.slane %v761_v48, %v725_v40  ;;  %v412_v55 = vrot.slane %v763_v49, %v725_v40 }
  0xae   :  { %v221_v56 = vrot.slane %v757_v39, %v729_v42  ;;  %v225_v57 = vrot.slane %v759_v47, %v729_v42  ;;  %v398_v58 = vrot.slane %v761_v48, %v729_v42  ;;  %v402_v59 = vrot.slane %v763_v49, %v729_v42 }
  0xaf   :  { %v245_v60 = vmul.f32 %v243_v51, %v236_v52  ;;  %v246_v61 = vmul.f32 %v243_v51, %v240_v53  ;;  %v413_v62 = vmul.f32 %v408_v54, %v243_v51  ;;  %v414_v63 = vmul.f32 %v412_v55, %v243_v51 }
  0xb0   :  { %v231_v1 = vmul.f32 %v229_v50, %v221_v56  ;;  %v232_v2 = vmul.f32 %v229_v50, %v225_v57  ;;  %v403_v4 = vmul.f32 %v398_v58, %v229_v50  ;;  %v404_v40 = vmul.f32 %v402_v59, %v229_v50  ;;  %v259_v5 = vpop.permute.xlu1 %258 }
  0xb1   :  { %v284_v6 = vrot.slane %v757_v39, %v731_v43  ;;  %v288_v7 = vrot.slane %v759_v47, %v731_v43  ;;  %v444_v9 = vrot.slane %v761_v48, %v731_v43  ;;  %v448_v42 = vrot.slane %v763_v49, %v731_v43 }
  0xb2   :  { %v247_v10 = vadd.f32 %v245_v60, %v231_v1  ;;  %v248_v11 = vadd.f32 %v246_v61, %v232_v2  ;;  %v415_v12 = vadd.f32 %v413_v62, %v403_v4  ;;  %v416_v13 = vadd.f32 %v414_v63, %v404_v40  ;;  %v339_v4 = vpop.permute.xlu0 %338 }
  0xb3   :  { %v252_v14 = vrot.slane %v757_v39, %v733_v44  ;;  %v256_v15 = vrot.slane %v759_v47, %v733_v44  ;;  %v420_v18 = vrot.slane %v761_v48, %v733_v44  ;;  %v424_v19 = vrot.slane %v763_v49, %v733_v44 }
  0xb4   :  { %v293_v20 = vmul.f32 %v291_v8, %v284_v6  ;;  %v294_v21 = vmul.f32 %v291_v8, %v288_v7  ;;  %v449_v26 = vmul.f32 %v444_v9, %v291_v8  ;;  %v450_v27 = vmul.f32 %v448_v42, %v291_v8 }
  0xb5   :  { %v275_v22 = vpop.permute.xlu1 %274  ;;  %v261_v43 = vmul.f32 %v259_v5, %v252_v14  ;;  %v262_v23 = vmul.f32 %v259_v5, %v256_v15  ;;  %v425_v24 = vmul.f32 %v420_v18, %v259_v5  ;;  %v426_v25 = vmul.f32 %v424_v19, %v259_v5 }
  0xb6   :  { %v480_v28 = vrot.slane %v761_v48, %v739_v46  ;;  %v484_v29 = vrot.slane %v763_v49, %v739_v46  ;;  %v268_v44 = vrot.slane %v757_v39, %v737_v16  ;;  %v272_v34 = vrot.slane %v759_v47, %v737_v16 }
  0xb7   :  { %v263_v30 = vadd.f32 %v261_v43, %v247_v10  ;;  %v264_v31 = vadd.f32 %v262_v23, %v248_v11  ;;  %v427_v32 = vadd.f32 %v425_v24, %v415_v12  ;;  %v428_v33 = vadd.f32 %v426_v25, %v416_v13 }
  0xb8   :  { %v432_v35 = vrot.slane %v761_v48, %v737_v16  ;;  %v436_v36 = vrot.slane %v763_v49, %v737_v16  ;;  %v300_v37 = vrot.slane %v757_v39, %v727_v41  ;;  %v304_v38 = vrot.slane %v759_v47, %v727_v41 }
  0xb9   :  { %v456_v50 = vrot.slane %v761_v48, %v727_v41  ;;  %v460_v51 = vrot.slane %v763_v49, %v727_v41  ;;  %v277_v52 = vmul.f32 %v275_v22, %v268_v44  ;;  %v278_v53 = vmul.f32 %v275_v22, %v272_v34 }
  0xba   :  { %v307_v17 = vpop.permute.xlu1 %306  ;;  %v437_v54 = vmul.f32 %v432_v35, %v275_v22  ;;  %v438_v55 = vmul.f32 %v436_v36, %v275_v22  ;;  %v316_v63 = vrot.slane %v757_v39, %v735_v45  ;;  %v320_v1 = vrot.slane %v759_v47, %v735_v45 }
  0xbb   :  { %v309_v56 = vmul.f32 %v307_v17, %v300_v37  ;;  %v310_v57 = vmul.f32 %v307_v17, %v304_v38  ;;  %v461_v16 = vmul.f32 %v456_v50, %v307_v17  ;;  %v462_v58 = vmul.f32 %v460_v51, %v307_v17 }
  0xbc   :  { %v279_v59 = vadd.f32 %v277_v52, %v263_v30  ;;  %v280_v60 = vadd.f32 %v278_v53, %v264_v31  ;;  %v439_v61 = vadd.f32 %v437_v54, %v427_v32  ;;  %v440_v62 = vadd.f32 %v438_v55, %v428_v33 }
  0xbd   :  { %v468_v41 = vrot.slane %v761_v48, %v735_v45  ;;  %v472_v2 = vrot.slane %v763_v49, %v735_v45  ;;  %v332_v48 = vrot.slane %v757_v39, %v739_v46  ;;  %v336_v45 = vrot.slane %v759_v47, %v739_v46 }
  0xbe   :  { %v295_v40 = vadd.f32 %v293_v20, %v279_v59  ;;  %v296_v5 = vadd.f32 %v294_v21, %v280_v60  ;;  %v451_v6 = vadd.f32 %v449_v26, %v439_v61  ;;  %v452_v7 = vadd.f32 %v450_v27, %v440_v62 }
  0xbf   :  { %v323_v8 = vpop.permute.xlu1 %322  ;;  %v485_v49 = vmul.f32 %v480_v28, %v339_v4  ;;  %v486_v18 = vmul.f32 %v484_v29, %v339_v4  ;;  %v341_v43 = vmul.f32 %v339_v4, %v332_v48  ;;  %v342_v23 = vmul.f32 %v339_v4, %v336_v45 }
  0xc0   :  { %v325_v9 = vmul.f32 %v323_v8, %v316_v63  ;;  %v326_v42 = vmul.f32 %v323_v8, %v320_v1  ;;  %v473_v10 = vmul.f32 %v468_v41, %v323_v8  ;;  %v474_v11 = vmul.f32 %v472_v2, %v323_v8 }
  0xc1   :  { %v311_v12 = vadd.f32 %v309_v56, %v295_v40  ;;  %v312_v13 = vadd.f32 %v310_v57, %v296_v5  ;;  %v463_v14 = vadd.f32 %v461_v16, %v451_v6  ;;  %v464_v15 = vadd.f32 %v462_v58, %v452_v7 }
  0xc3   :  { %v327_v19 = vadd.f32 %v325_v9, %v311_v12  ;;  %v328_v20 = vadd.f32 %v326_v42, %v312_v13  ;;  %v475_v21 = vadd.f32 %v473_v10, %v463_v14  ;;  %v476_v22 = vadd.f32 %v474_v11, %v464_v15 }
  0xc4   :  { %v502_v26 = vpop.permute.xlu1 %501 }
  0xc5   :  { %v487_v24 = vadd.f32 %v485_v49, %v475_v21  ;;  %v488_v25 = vadd.f32 %v486_v18, %v476_v22  ;;  %v343_v27 = vadd.f32 %v341_v43, %v327_v19  ;;  %v344_v30 = vadd.f32 %v342_v23, %v328_v20 }
  0xc7   :  { %v491_v31 = vrot.slane %v487_v24, 4  ;;  %v492_v32 = vrot.slane %v488_v25, 4 }
  0xc9   :  { %v496_v39 = vsel %vm495_vm8, %v343_v27, %v491_v31  ;;  %v497_v33 = vsel %vm495_vm8, %v344_v30, %v492_v32 }
  0xca   :  { %v504_v44 = vadd.f32 %v502_v26, %v496_v39  ;;  %v505_v46 = vadd.f32 %v502_v26, %v497_v33 }
  0xcc   :  { %v506_v47 = vadd.f32 %v504_v44, %v614_v0  ;;  %v507_v28 = vadd.f32 %v505_v46, %v622_v3 }
  0xce   :  { %508 = vst [vmem:[%s843_s6] sm:$0xff] %v506_v47  ;;  %509 = vst [vmem:[%s843_s6 + $0x8] sm:$0xff] %v507_v28 }

</bundles_post_ra>
